<compile_context>
chip_gen: v5e
topology: v5e:2x2
jax: 0.10.0
libtpu: 0.0.40
codegen_flags: <defaults>
</compile_context>

<pallas_src>
import functools

import jax
import jax.numpy as jnp
from jax.experimental import pallas as pl
from jax.experimental.pallas import tpu as pltpu

_LANES = 128      # vreg lane width
_SUBLANES = 8     # f32 sublane tile


# ---------------------------------------------------------------------------
# Pallas kernel: collapsed conv->relu->conv as an elementwise map (pure VPU)
# ---------------------------------------------------------------------------
def _mix_kernel(params_ref, x_ref, o_ref):
    # params_ref (SMEM, shape (3,)): [c_pos, c_neg, bias]
    x = x_ref[...]                                       # (tile_rows, 128) f32
    coef = jnp.where(x > 0, params_ref[0], params_ref[1])  # select
    o_ref[...] = x * coef + params_ref[2]                  # single mul+add


def _round_up(v, m):
    return ((v + m - 1) // m) * m


@functools.partial(jax.jit, static_argnames=("tile_rows",))
def dummy_model_mix_pallas(x_nchw, w1, w2, b2, *, tile_rows=2048):
    """x_nchw: (B, 1, H, W) float32. w1: (1, 10), w2: (10, 1), b2: (1,)."""
    B, C_in, H, W = x_nchw.shape
    assert C_in == 1
    M = B * H * W

    # ---- collapse the two 1x1 convs + ReLU into two scalars (done once, on
    #      ~40 bytes of parameters, fused under the same jit) ---------------
    w1v = w1.reshape(-1).astype(jnp.float32)              # (10,)
    w2v = w2.reshape(-1).astype(jnp.float32)              # (10,)
    prod = w1v * w2v
    c_pos = jnp.sum(jnp.where(w1v > 0, prod, 0.0))
    c_neg = jnp.sum(jnp.where(w1v < 0, prod, 0.0))
    params = jnp.stack([c_pos, c_neg, b2.reshape(()).astype(jnp.float32)])

    # ---- lane-dense layout: pixels on the lane axis ------------------------
    # C=1 means NCHW flatten order == NHWC order, so no transpose is needed.
    # Only pad the ragged tail when M is not 128-aligned; aligned inputs go
    # through a free reshape (no extra HBM pass).
    x_flat = x_nchw.reshape(-1).astype(jnp.float32)
    m_lane = _round_up(M, _LANES)
    needs_pad = m_lane != M
    if needs_pad:
        x_flat = jnp.pad(x_flat, (0, m_lane - M))
    rows = m_lane // _LANES
    x_slab = x_flat.reshape(rows, _LANES)

    # ---- tile selection -----------------------------------------------------
    if rows % _SUBLANES == 0 and rows >= 2 * _SUBLANES:
        # (8,128)-aligned tiles; aim for >=2 grid steps so the parallel axis
        # can be sharded across both TensorCores on v7x.
        tr = min(tile_rows, rows // 2)
        tr = max(_SUBLANES, (tr // _SUBLANES) * _SUBLANES)
    else:
        # Single block equal to the full array shape (allowed regardless of
        # the (8,128) divisibility rule) -> zero padding for small inputs.
        tr = rows
    grid = (pl.cdiv(rows, tr),)   # ragged last block handled by Pallas

    out_slab = pl.pallas_call(
        _mix_kernel,
        out_shape=jax.ShapeDtypeStruct((rows, _LANES), jnp.float32),
        grid=grid,
        in_specs=[
            pl.BlockSpec(memory_space=pltpu.MemorySpace.SMEM),   # 3 scalars
            pl.BlockSpec((tr, _LANES), lambda i: (i, 0)),        # x slab tile
        ],
        out_specs=pl.BlockSpec((tr, _LANES), lambda i: (i, 0)),
        compiler_params=pltpu.CompilerParams(
            dimension_semantics=("parallel",)),
        cost_estimate=pl.CostEstimate(
            flops=3 * M, transcendentals=0, bytes_accessed=8 * M),
    )(params, x_slab)

    out_flat = out_slab.reshape(-1)
    if needs_pad:
        out_flat = out_flat[:M]                  # strip tail only if padded
    return out_flat.reshape(B, 1, H, W).astype(x_nchw.dtype)


# ---------------------------------------------------------------------------
# Deterministic parameter construction
# ---------------------------------------------------------------------------
def make_params(key):
    k_mu, k_rho, k_eps, k_w2, k_b2 = jax.random.split(key, 5)

    # BayesConv2d(1, 10, 1, bias=False): variational posterior params
    # mu, rho have shape (out=10, in=1, 1, 1); weight = mu + softplus(rho)*eps
    mu = jax.random.normal(k_mu, (10, 1, 1, 1), jnp.float32) * 0.1
    rho = jax.random.normal(k_rho, (10, 1, 1, 1), jnp.float32) - 3.0
    eps = jax.random.normal(k_eps, (10, 1, 1, 1), jnp.float32)
    sigma = jnp.log1p(jnp.exp(rho))                    # softplus
    w_bayes = mu + sigma * eps                         # deterministic "sample"
    # TODO(synk): StochasticModel resamples eps each forward; here one fixed
    # deterministic sample is used so the kernel is reproducible.

    # reshape 1x1 conv weight (out, in, 1, 1) -> matmul form (in, out)
    w1 = jnp.transpose(w_bayes.reshape(10, 1), (1, 0))          # (1, 10)

    # Conv2d(10, 1, 1) with bias
    w2_conv = jax.random.normal(k_w2, (1, 10, 1, 1), jnp.float32) * 0.1
    w2 = jnp.transpose(w2_conv.reshape(1, 10), (1, 0))          # (10, 1)
    b2 = jax.random.normal(k_b2, (1,), jnp.float32) * 0.1       # (1,)
    return w1, w2, b2


def reference_forward(x_nchw, w1, w2, b2):
    """Pure-JAX reference with the original (uncollapsed) matmul+ReLU math."""
    B, C, H, W = x_nchw.shape
    x = jnp.transpose(x_nchw, (0, 2, 3, 1)).reshape(-1, C)
    h = jnp.maximum(x @ w1, 0.0)
    y = h @ w2 + b2.reshape(1, 1)
    return jnp.transpose(y.reshape(B, H, W, 1), (0, 3, 1, 2))


if __name__ == "__main__":
    key = jax.random.PRNGKey(0)
    k_x, k_p = jax.random.split(key)

    # Input consistent with Conv2d(in_channels=1): (B=2, C=1, H=16, W=16)
    x = jax.random.normal(k_x, (2, 1, 16, 16), jnp.float32)
    w1, w2, b2 = make_params(k_p)

    out = dummy_model_mix_pallas(x, w1, w2, b2)
    out = jax.block_until_ready(out)

    ref = reference_forward(x, w1, w2, b2)
    assert out.shape == (2, 1, 16, 16)
    assert jnp.allclose(out, ref, atol=1e-5, rtol=1e-5)

    print("KERNEL_OK")
</pallas_src>

<mosaic_0001>
module attributes {stable_mosaic.version = 11 : i64} {
  func.func @_mix_kernel(%arg0: i32, %arg1: memref<3xf32, #tpu.memory_space<smem>>, %arg2: memref<4x128xf32, #tpu.memory_space<vmem>>, %arg3: memref<4x128xf32, #tpu.memory_space<vmem>>) attributes {dimension_semantics = [#tpu.dimension_semantics<parallel>], iteration_bounds = array<i64: 1>, scalar_prefetch = 0 : i64, scratch_operands = 0 : i64, tpu.core_type = #tpu.core_type<tc>, window_params = [{transform_indices = @transform_0, window_bounds = array<i64: 3>}, {transform_indices = @transform_1, window_bounds = array<i64: 4, 128>}, {transform_indices = @transform_2, window_bounds = array<i64: 4, 128>}]} {
    %c0 = arith.constant 0 : index
    %c0_0 = arith.constant 0 : index
    %0 = vector.load %arg2[%c0, %c0_0] : memref<4x128xf32, #tpu.memory_space<vmem>>, vector<4x128xf32>
    %cst = arith.constant 0.000000e+00 : f32
    %1 = vector.broadcast %cst : f32 to vector<4x128xf32>
    %2 = arith.cmpf ogt, %0, %1 : vector<4x128xf32>
    %c0_1 = arith.constant 0 : index
    %3 = memref.load %arg1[%c0_1] : memref<3xf32, #tpu.memory_space<smem>>
    %c1 = arith.constant 1 : index
    %4 = memref.load %arg1[%c1] : memref<3xf32, #tpu.memory_space<smem>>
    %5 = vector.broadcast %3 : f32 to vector<4x128xf32>
    %6 = vector.broadcast %4 : f32 to vector<4x128xf32>
    %7 = arith.select %2, %5, %6 : vector<4x128xi1>, vector<4x128xf32>
    %8 = arith.mulf %0, %7 : vector<4x128xf32>
    %c2 = arith.constant 2 : index
    %9 = memref.load %arg1[%c2] : memref<3xf32, #tpu.memory_space<smem>>
    %10 = vector.broadcast %9 : f32 to vector<4x128xf32>
    %11 = arith.addf %8, %10 : vector<4x128xf32>
    %c0_2 = arith.constant 0 : index
    %c0_3 = arith.constant 0 : index
    %12 = vector.load %arg3[%c0_2, %c0_3] : memref<4x128xf32, #tpu.memory_space<vmem>>, vector<4x128xf32>
    tpu.vector_store %arg3[%c0_2, %c0_3], %11 {strides = array<i32>} : memref<4x128xf32, #tpu.memory_space<vmem>>, vector<4x128xf32>,
    return
  }
  func.func @transform_0(%arg0: i32) -> i32 {
    %c0_i32 = arith.constant 0 : i32
    %c0_i32_0 = arith.constant 0 : i32
    return %c0_i32 : i32
  }
  func.func @transform_1(%arg0: i32) -> (i32, i32) {
    %c0_i32 = arith.constant 0 : i32
    %c0_i32_0 = arith.constant 0 : i32
    return %arg0, %c0_i32 : i32, i32
  }
  func.func @transform_2(%arg0: i32) -> (i32, i32) {
    %c0_i32 = arith.constant 0 : i32
    %c0_i32_0 = arith.constant 0 : i32
    return %arg0, %c0_i32 : i32, i32
  }
}

</mosaic_0001>

<bundles_post_ra>
// kernel: dummy_model_mix_pallas.1
= control target key start
LH: loop header
LB: loop body
LE: loop exit
PB: predicated region body
PF: predicated region fallthrough
CT: control target
= control target key end

     0   :  { %7 = vsyncpa [#allocation3], 0  ;;  %s58_s12 = smov [#allocation2]   ;;  %s83_s0 = inlined_call_operand.vmem [shape: f32[3], index: 0, kind: input, shape index: {}]   ;;  %s84_s1 = inlined_call_operand.vmem [shape: f32[4,128], index: 1, kind: input, shape index: {}]   ;;  %s85_s2 = inlined_call_operand.vmem [shape: f32[4,128], index: 2, kind: output, shape index: {}]  }
   0x1   :  { %s13_s11 = sshll.u32 %s83_s0, 4  ;;  %s14_s11 = int_to_ptr.vmem [resolvable:$true] %s13_s11 }
   0x2   :  { %16 = dma.vmem_to_smem %s14_s11, 16, %s58_s12, [#allocation3]  }
   0x3   :  { %56 = dma.done.wait [#allocation3], 16  }
   0x4   :  { %57 = vsyncadd [#allocation3], 4294967280 }
   0x5   :  { %23 = sfence }
   0x6   :  { %s26_s13 = sld [smem:[#allocation2]]  ;;  %v24_v0 = vld [vmem:[%s84_s1] sm:$0xf] }
   0x7   :  { %s41_s14 = sld [smem:[#allocation2 + $0x1]]  ;;  %vm25_vm0 = vcmp.gt.f32.partialorder %v24_v0, 0.0 }
   0x8   :  { %s42_s17 = sld [smem:[#allocation2 + $0x2]] }
   0xc   :  { %v28_v1 = vstv %s26_s13 }
   0xd   :  { %v29_v2 = vstv %s41_s14 }
   0xe   :  { %v30_v3 = vsel %vm25_vm0, %v28_v1, %v29_v2  ;;  %v33_v4 = vstv %s42_s17 }
   0xf   :  { %v31_v5 = vmul.f32 %v30_v3, %v24_v0 }
  0x11   :  { %v34_v6 = vadd.f32 %v33_v4, %v31_v5 }
  0x13   :  { %35 = vst [vmem:[%s85_s2] sm:$0xf] %v34_v6 }
  0x14   :  { %40 = vsyncpa [#allocation3], 1 }

</bundles_post_ra>
